<compile_context>
chip_gen: v7x
topology: tpu7x:2x2x1
jax: 0.10.0
libtpu: 0.0.40
codegen_flags: <defaults>
</compile_context>

<pallas_src>
import functools

import jax
import jax.numpy as jnp
from jax.experimental import pallas as pl
from jax.experimental.pallas import tpu as pltpu

LEN_LINE_INDEX = 2  # LineIndex = {X, Y}


def _round_up(x, m):
    return (x + m - 1) // m * m


def _cdiv(a, b):
    return -(-a // b)


def _choose_tiling(M, tile_rows):
    """Pick (tile_rows, M_pad, n_tiles) for the row grid."""
    align = 16  # bf16 sublane packing for the in-kernel q cast
    M_al = _round_up(max(M, 1), align)
    n_tiles = max(1, _cdiv(M_al, tile_rows))
    # v7x has two TensorCores; give the "parallel" grid axis >= 2 steps
    # whenever there are enough rows to split (harmless on v5e/v6e).
    if n_tiles == 1 and M_al >= 2 * align:
        n_tiles = 2
    tile = _round_up(_cdiv(M_al, n_tiles), align)
    return tile, tile * n_tiles, n_tiles


def _line_head_kernel(q_ref, w0m_ref, b0m_ref, w1_ref, b1_ref, w2_ref, b2_ref,
                      states_ref, mask_ref, *, d_ffn):
    """One row-tile of the LineHead forward pass (num_layers == 3).

        h0m = q @ [w0 | wm] + [b0 | bm]     (mask head folded into layer 0)
        m   = h0m[:, d_ffn]                 (linear mask, taken pre-relu)
        h0  = relu(h0m)                     (mask col killed by zero row in w1p)
        h1  = relu(h0 @ w1p + b1)
        states = tanh(h1 @ w2 + b2)
    """
    # q is read from HBM as f32 and cast to bf16 in-kernel (no extra HBM pass).
    q = q_ref[...].astype(jnp.bfloat16)                       # (T, d_in)

    h0m = jnp.dot(q, w0m_ref[...],
                  preferred_element_type=jnp.float32) + b0m_ref[...]
    m = h0m[:, d_ffn:d_ffn + 1]                               # (T, 1) mask, pre-relu
    h0 = jnp.maximum(h0m, 0.0)

    h1 = jnp.dot(h0.astype(jnp.bfloat16), w1_ref[...],
                 preferred_element_type=jnp.float32) + b1_ref[...]
    h1 = jnp.maximum(h1, 0.0)

    s = jnp.dot(h1.astype(jnp.bfloat16), w2_ref[...],
                preferred_element_type=jnp.float32) + b2_ref[...]

    # tanh over the live output lanes only; f32 on purpose (v5e has no bf16 EUP).
    states_ref[...] = jnp.tanh(s).astype(states_ref.dtype)
    mask_ref[...] = m.astype(mask_ref.dtype)


def line_head_forward(queries, params, num_line_poses, *, tile_rows=2048):
    """queries: (batch, num_queries, d_input) float32 -> (states, mask)."""
    batch, num_queries, d_input = queries.shape
    w0, b0, w1, b1, w2, b2, wm, bm = params
    d_ffn = w0.shape[1]
    d_out = num_line_poses * LEN_LINE_INDEX
    assert w2.shape[1] == d_out

    M = batch * num_queries
    tile_rows, M_pad, n_tiles = _choose_tiling(M, tile_rows)

    q2d = queries.reshape(M, d_input).astype(jnp.float32)
    if M_pad != M:  # skip the pad copy when already tile-aligned
        q2d = jnp.pad(q2d, ((0, M_pad - M), (0, 0)))

    # Fold the width-1 mask head into layer 0:  q @ [w0 | wm].  The appended
    # zero row in w1 makes the relu'd mask column contribute nothing to layer 1.
    w0m = jnp.concatenate([w0, wm], axis=1).astype(jnp.bfloat16)   # (d_in, d_ffn+1)
    b0m = jnp.concatenate([b0, bm], axis=1).astype(jnp.float32)    # (1, d_ffn+1)
    w1p = jnp.concatenate([w1, jnp.zeros((1, d_ffn), w1.dtype)],
                          axis=0).astype(jnp.bfloat16)             # (d_ffn+1, d_ffn)
    b1f = b1.astype(jnp.float32)                                   # (1, d_ffn)
    w2b = w2.astype(jnp.bfloat16)                                  # (d_ffn, d_out)
    b2f = b2.astype(jnp.float32)                                   # (1, d_out)

    # Advisory cost estimate for XLA scheduling around the custom call.
    cost = pl.CostEstimate(
        flops=2 * M_pad * (d_input * (d_ffn + 1)
                           + (d_ffn + 1) * d_ffn
                           + d_ffn * d_out),
        transcendentals=M_pad * d_out,
        bytes_accessed=(M_pad * d_input * 4                               # q (f32)
                        + (w0m.size + w1p.size + w2b.size) * 2            # weights bf16
                        + (b0m.size + b1f.size + b2f.size) * 4            # biases f32
                        + M_pad * (d_out + 1) * 4),                       # outputs f32
    )

    # VMEM footprint estimate (narrow blocks pad to 128 lanes in VMEM layout).
    lane = 128
    weight_bytes = ((w0m.size + w1p.size + w2b.size) * 2
                    + (b0m.size + b1f.size + b2f.size) * 4)
    vmem_est = (2 * tile_rows * _round_up(d_input, lane) * 4       # q blocks (dbl-buf)
                + 2 * tile_rows * lane * 4                         # states blocks
                + 2 * tile_rows * lane * 4                         # mask blocks
                + 2 * weight_bytes                                 # weights (dbl-buf)
                + 4 * tile_rows * _round_up(d_ffn + 1, lane) * 4)  # f32 intermediates

    cp_kwargs = dict(dimension_semantics=("parallel",))
    if vmem_est > 14 * (1 << 20):  # only raise above the v5e 16 MiB default when needed
        try:
            vmem_cap = pltpu.get_tpu_info().vmem_capacity_bytes
        except Exception:
            vmem_cap = 64 << 20  # conservative: v7x physical VMEM per TensorCore
        # Never lower below the 32 MiB v6e/v7x default, never exceed physical VMEM.
        cp_kwargs["vmem_limit_bytes"] = int(
            min(max(vmem_est + (4 << 20), 32 << 20), vmem_cap - (8 << 20)))
    compiler_params = pltpu.CompilerParams(**cp_kwargs)

    kernel = functools.partial(_line_head_kernel, d_ffn=d_ffn)
    full2d = lambda shape: pl.BlockSpec(shape, lambda i: (0, 0))  # grid-invariant

    states2d, mask2d = pl.pallas_call(
        kernel,
        out_shape=(jax.ShapeDtypeStruct((M_pad, d_out), jnp.float32),
                   jax.ShapeDtypeStruct((M_pad, 1), jnp.float32)),
        grid_spec=pltpu.PrefetchScalarGridSpec(
            num_scalar_prefetch=0,
            grid=(n_tiles,),
            in_specs=[
                pl.BlockSpec((tile_rows, d_input), lambda i: (i, 0)),  # q rows (f32)
                full2d((d_input, d_ffn + 1)), full2d((1, d_ffn + 1)),  # layer 0 + mask
                full2d((d_ffn + 1, d_ffn)),   full2d((1, d_ffn)),      # layer 1
                full2d((d_ffn, d_out)),       full2d((1, d_out)),      # layer 2
            ],
            out_specs=[
                pl.BlockSpec((tile_rows, d_out), lambda i: (i, 0)),    # states
                pl.BlockSpec((tile_rows, 1), lambda i: (i, 0)),        # mask
            ],
        ),
        compiler_params=compiler_params,
        cost_estimate=cost,
    )(q2d, w0m, b0m, w1p, b1f, w2b, b2f)

    states = states2d[:M].reshape(batch, num_queries, num_line_poses, LEN_LINE_INDEX)
    mask = mask2d[:M, 0].reshape(batch, num_queries)
    return states, mask


def init_params(key, d_input, d_ffn, num_layers, num_line_poses):
    """Deterministic synthetic parameters matching LineHead.__init__ shapes.

    FFN(d_input, d_ffn, num_line_poses * 2, num_layers=3) ->
      Linear(d_input, d_ffn), Linear(d_ffn, d_ffn), Linear(d_ffn, d_out)
    plus Linear(d_input, 1) for the mask.  Weights stored as (in, out).
    """
    assert num_layers == 3, "kernel body is written for num_layers == 3"
    d_out = num_line_poses * LEN_LINE_INDEX
    ks = jax.random.split(key, 8)
    scale = 0.1
    w0 = scale * jax.random.normal(ks[0], (d_input, d_ffn), jnp.float32)
    b0 = scale * jax.random.normal(ks[1], (1, d_ffn), jnp.float32)
    w1 = scale * jax.random.normal(ks[2], (d_ffn, d_ffn), jnp.float32)
    b1 = scale * jax.random.normal(ks[3], (1, d_ffn), jnp.float32)
    w2 = scale * jax.random.normal(ks[4], (d_ffn, d_out), jnp.float32)
    b2 = scale * jax.random.normal(ks[5], (1, d_out), jnp.float32)
    wm = scale * jax.random.normal(ks[6], (d_input, 1), jnp.float32)
    bm = scale * jax.random.normal(ks[7], (1, 1), jnp.float32)
    return (w0, b0, w1, b1, w2, b2, wm, bm)


def line_head_reference(queries, params, num_line_poses):
    """Plain-JAX f32 reference for correctness check."""
    w0, b0, w1, b1, w2, b2, wm, bm = params
    b, q, _ = queries.shape
    x = queries
    x = jax.nn.relu(x @ w0 + b0)
    x = jax.nn.relu(x @ w1 + b1)
    s = jnp.tanh(x @ w2 + b2).reshape(b, q, num_line_poses, LEN_LINE_INDEX)
    m = (queries @ wm + bm)[..., 0]
    return s, m


if __name__ == "__main__":
    # Small shapes consistent with the module's forward pass.
    batch, num_queries = 2, 8
    d_input, d_ffn, num_layers = 32, 32, 3
    num_line_poses = 4          # d_out = 8

    key = jax.random.PRNGKey(0)
    k_q, k_p = jax.random.split(key)
    queries = jax.random.normal(k_q, (batch, num_queries, d_input), jnp.float32)
    params = init_params(k_p, d_input, d_ffn, num_layers, num_line_poses)

    fwd = jax.jit(functools.partial(line_head_forward,
                                    num_line_poses=num_line_poses))
    states, mask = fwd(queries, params)
    jax.block_until_ready((states, mask))

    ref_states, ref_mask = line_head_reference(queries, params, num_line_poses)
    assert states.shape == (batch, num_queries, num_line_poses, LEN_LINE_INDEX)
    assert mask.shape == (batch, num_queries)
    # bf16 MXU operands with f32 accumulation -> loosened tolerance vs f32 ref.
    assert jnp.allclose(states, ref_states, atol=2e-2, rtol=2e-2)
    assert jnp.allclose(mask, ref_mask, atol=2e-2, rtol=2e-2)

    print("KERNEL_OK")
</pallas_src>

<mosaic_0001>
module attributes {stable_mosaic.version = 11 : i64} {
  func.func @_line_head_kernel(%arg0: i32, %arg1: memref<16x32xf32, #tpu.memory_space<vmem>>, %arg2: memref<32x33xbf16, #tpu.memory_space<vmem>>, %arg3: memref<1x33xf32, #tpu.memory_space<vmem>>, %arg4: memref<33x32xbf16, #tpu.memory_space<vmem>>, %arg5: memref<1x32xf32, #tpu.memory_space<vmem>>, %arg6: memref<32x8xbf16, #tpu.memory_space<vmem>>, %arg7: memref<1x8xf32, #tpu.memory_space<vmem>>, %arg8: memref<16x8xf32, #tpu.memory_space<vmem>>, %arg9: memref<16x1xf32, #tpu.memory_space<vmem>>) attributes {dimension_semantics = [#tpu.dimension_semantics<parallel>], iteration_bounds = array<i64: 1>, scalar_prefetch = 0 : i64, scratch_operands = 0 : i64, tpu.core_type = #tpu.core_type<tc>, window_params = [{transform_indices = @transform_0, window_bounds = array<i64: 16, 32>}, {pipeline_mode = #tpu.pipeline_mode<synchronous>, transform_indices = @transform_1, window_bounds = array<i64: 32, 33>}, {pipeline_mode = #tpu.pipeline_mode<synchronous>, transform_indices = @transform_2, window_bounds = array<i64: 1, 33>}, {pipeline_mode = #tpu.pipeline_mode<synchronous>, transform_indices = @transform_3, window_bounds = array<i64: 33, 32>}, {pipeline_mode = #tpu.pipeline_mode<synchronous>, transform_indices = @transform_4, window_bounds = array<i64: 1, 32>}, {pipeline_mode = #tpu.pipeline_mode<synchronous>, transform_indices = @transform_5, window_bounds = array<i64: 32, 8>}, {pipeline_mode = #tpu.pipeline_mode<synchronous>, transform_indices = @transform_6, window_bounds = array<i64: 1, 8>}, {transform_indices = @transform_7, window_bounds = array<i64: 16, 8>}, {transform_indices = @transform_8, window_bounds = array<i64: 16, 1>}]} {
    %c0 = arith.constant 0 : index
    %c0_0 = arith.constant 0 : index
    %0 = vector.load %arg1[%c0, %c0_0] : memref<16x32xf32, #tpu.memory_space<vmem>>, vector<16x32xf32>
    %1 = arith.truncf %0 : vector<16x32xf32> to vector<16x32xbf16>
    %c0_1 = arith.constant 0 : index
    %c0_2 = arith.constant 0 : index
    %2 = vector.load %arg2[%c0_1, %c0_2] : memref<32x33xbf16, #tpu.memory_space<vmem>>, vector<32x33xbf16>
    %cst = arith.constant dense<0.000000e+00> : vector<16x33xf32>
    %3 = tpu.matmul %1, %2, %cst {dimension_numbers = #tpu.dot_dimension_numbers<[1], [0], [0], [1], [0, 0, 1, 1], [], []>} : vector<16x32xbf16>, vector<32x33xbf16>, vector<16x33xf32> -> vector<16x33xf32>
    %c0_3 = arith.constant 0 : index
    %c0_4 = arith.constant 0 : index
    %4 = vector.load %arg3[%c0_3, %c0_4] : memref<1x33xf32, #tpu.memory_space<vmem>>, vector<1x33xf32>
    %5 = vector.broadcast %4 : vector<1x33xf32> to vector<16x33xf32>
    %6 = arith.addf %3, %5 : vector<16x33xf32>
    %7 = vector.extract_strided_slice %6 {offsets = [0, 32], sizes = [16, 1], strides = [1, 1]} : vector<16x33xf32> to vector<16x1xf32>
    %cst_5 = arith.constant 0.000000e+00 : f32
    %8 = vector.broadcast %cst_5 : f32 to vector<16x33xf32>
    %9 = arith.maximumf %6, %8 : vector<16x33xf32>
    %10 = arith.truncf %9 : vector<16x33xf32> to vector<16x33xbf16>
    %c0_6 = arith.constant 0 : index
    %c0_7 = arith.constant 0 : index
    %11 = vector.load %arg4[%c0_6, %c0_7] : memref<33x32xbf16, #tpu.memory_space<vmem>>, vector<33x32xbf16>
    %cst_8 = arith.constant dense<0.000000e+00> : vector<16x32xf32>
    %12 = tpu.matmul %10, %11, %cst_8 {dimension_numbers = #tpu.dot_dimension_numbers<[1], [0], [0], [1], [0, 0, 1, 1], [], []>} : vector<16x33xbf16>, vector<33x32xbf16>, vector<16x32xf32> -> vector<16x32xf32>
    %c0_9 = arith.constant 0 : index
    %c0_10 = arith.constant 0 : index
    %13 = vector.load %arg5[%c0_9, %c0_10] : memref<1x32xf32, #tpu.memory_space<vmem>>, vector<1x32xf32>
    %14 = vector.broadcast %13 : vector<1x32xf32> to vector<16x32xf32>
    %15 = arith.addf %12, %14 : vector<16x32xf32>
    %cst_11 = arith.constant 0.000000e+00 : f32
    %16 = vector.broadcast %cst_11 : f32 to vector<16x32xf32>
    %17 = arith.maximumf %15, %16 : vector<16x32xf32>
    %18 = arith.truncf %17 : vector<16x32xf32> to vector<16x32xbf16>
    %c0_12 = arith.constant 0 : index
    %c0_13 = arith.constant 0 : index
    %19 = vector.load %arg6[%c0_12, %c0_13] : memref<32x8xbf16, #tpu.memory_space<vmem>>, vector<32x8xbf16>
    %cst_14 = arith.constant dense<0.000000e+00> : vector<16x8xf32>
    %20 = tpu.matmul %18, %19, %cst_14 {dimension_numbers = #tpu.dot_dimension_numbers<[1], [0], [0], [1], [0, 0, 1, 1], [], []>} : vector<16x32xbf16>, vector<32x8xbf16>, vector<16x8xf32> -> vector<16x8xf32>
    %c0_15 = arith.constant 0 : index
    %c0_16 = arith.constant 0 : index
    %21 = vector.load %arg7[%c0_15, %c0_16] : memref<1x8xf32, #tpu.memory_space<vmem>>, vector<1x8xf32>
    %22 = vector.broadcast %21 : vector<1x8xf32> to vector<16x8xf32>
    %23 = arith.addf %20, %22 : vector<16x8xf32>
    %24 = math.tanh %23 : vector<16x8xf32>
    %c0_17 = arith.constant 0 : index
    %c0_18 = arith.constant 0 : index
    %25 = vector.load %arg8[%c0_17, %c0_18] : memref<16x8xf32, #tpu.memory_space<vmem>>, vector<16x8xf32>
    tpu.vector_store %arg8[%c0_17, %c0_18], %24 {strides = array<i32>} : memref<16x8xf32, #tpu.memory_space<vmem>>, vector<16x8xf32>,
    %c0_19 = arith.constant 0 : index
    %c0_20 = arith.constant 0 : index
    %26 = vector.load %arg9[%c0_19, %c0_20] : memref<16x1xf32, #tpu.memory_space<vmem>>, vector<16x1xf32>
    tpu.vector_store %arg9[%c0_19, %c0_20], %7 {strides = array<i32>} : memref<16x1xf32, #tpu.memory_space<vmem>>, vector<16x1xf32>,
    return
  }
  func.func @transform_0(%arg0: i32) -> (i32, i32) {
    %c0_i32 = arith.constant 0 : i32
    %c0_i32_0 = arith.constant 0 : i32
    return %arg0, %c0_i32 : i32, i32
  }
  func.func @transform_1(%arg0: i32) -> (i32, i32) {
    %c0_i32 = arith.constant 0 : i32
    %c0_i32_0 = arith.constant 0 : i32
    %c0_i32_1 = arith.constant 0 : i32
    return %c0_i32, %c0_i32_0 : i32, i32
  }
  func.func @transform_2(%arg0: i32) -> (i32, i32) {
    %c0_i32 = arith.constant 0 : i32
    %c0_i32_0 = arith.constant 0 : i32
    %c0_i32_1 = arith.constant 0 : i32
    return %c0_i32, %c0_i32_0 : i32, i32
  }
  func.func @transform_3(%arg0: i32) -> (i32, i32) {
    %c0_i32 = arith.constant 0 : i32
    %c0_i32_0 = arith.constant 0 : i32
    %c0_i32_1 = arith.constant 0 : i32
    return %c0_i32, %c0_i32_0 : i32, i32
  }
  func.func @transform_4(%arg0: i32) -> (i32, i32) {
    %c0_i32 = arith.constant 0 : i32
    %c0_i32_0 = arith.constant 0 : i32
    %c0_i32_1 = arith.constant 0 : i32
    return %c0_i32, %c0_i32_0 : i32, i32
  }
  func.func @transform_5(%arg0: i32) -> (i32, i32) {
    %c0_i32 = arith.constant 0 : i32
    %c0_i32_0 = arith.constant 0 : i32
    %c0_i32_1 = arith.constant 0 : i32
    return %c0_i32, %c0_i32_0 : i32, i32
  }
  func.func @transform_6(%arg0: i32) -> (i32, i32) {
    %c0_i32 = arith.constant 0 : i32
    %c0_i32_0 = arith.constant 0 : i32
    %c0_i32_1 = arith.constant 0 : i32
    return %c0_i32, %c0_i32_0 : i32, i32
  }
  func.func @transform_7(%arg0: i32) -> (i32, i32) {
    %c0_i32 = arith.constant 0 : i32
    %c0_i32_0 = arith.constant 0 : i32
    return %arg0, %c0_i32 : i32, i32
  }
  func.func @transform_8(%arg0: i32) -> (i32, i32) {
    %c0_i32 = arith.constant 0 : i32
    %c0_i32_0 = arith.constant 0 : i32
    return %arg0, %c0_i32 : i32, i32
  }
}

</mosaic_0001>

<bundles_post_ra>
// kernel: squeeze.1
= control target key start
LH: loop header
LB: loop body
LE: loop exit
PB: predicated region body
PF: predicated region fallthrough
CT: control target
= control target key end

     0   :  { %s85_s0 = inlined_call_operand.vmem [shape: f32[16], index: 0, kind: input, shape index: {}]   ;;  %s86_s1 = inlined_call_operand.hbm [shape: f32[2,8], index: 1, kind: output, shape index: {}]  }
   0x1   :  { %v5_v0 = vld [vmem:[%s85_s0] sm:$0x1] }
   0x2   :  { %2 = vsyncpa [#allocation1], 0  ;;  %6 = vst [vmem:[#allocation3] sm:$0x1] %v5_v0  ;;  %vm8_vm0 = vcmask 64512   ;;  %s58_s0 = smov 120  }
   0x3   :  { %s59_s8 = smov [#allocation0]  }
   0x4   :  { %s26_s9 = sshll.u32 %s59_s8, 4  ;;  %s27_s9 = int_to_ptr.vmem [resolvable:$true] %s26_s9 }
   0x5   :  { %s34_s10 = scalar_lea.vmem %s27_s9, 32  ;;  %p39_p1 = scmp.lt.s32.totalorder %s27_s9, %s27_s9 }
   0x6   :  { %p35_p0 = scmp.ne.s32.totalorder %s27_s9, %s34_s10  ;;  %p40_p2 = scmp.lt.s32.totalorder %s34_s10, %s34_s10 }
   0x8   :  { %p41_p3 = por %p40_p2, %p39_p1 }
   0x9   :  { %v10_v1 = vld [vmem:[#allocation3] sm:$0x1]  }
   0xa   :  { %v7_v2 = vld [vmem:[#allocation3] sm:$0x1]   ;;  %11 = vrot.lane.b32.xlu0 %v10_v1, %s58_s0  ;;  %p42_p4 = pnand %p41_p3, %p35_p0 }
   0xb   :  { %9 = vst.msk [vmem:[#allocation2] sm:$0x1] %vm8_vm0, %v7_v2  }
  0x7c   :  { %v12_v3 = vpop.permute.xlu0 %11  }
  0x7d   :  { %15 = vst.msk [vmem:[#allocation2 + $0x1] sm:$0x1] %vm8_vm0, %v12_v3  }
  0x84   :  { %v19_v4 = vld [vmem:[#allocation2] sm:$0x3] }
  0x85   :  { %21 = vst [vmem:[#allocation0] sm:$0x3] %v19_v4 }
  0x86   :  { %45 = shalt.err (!%p42_p4)
}
  0x87   :  { %s46_s13 = scalar_lea.hbm %s86_s1, 32 }
  0x88   :  { %p47_p5 = scmp.ne.s32.totalorder %s86_s1, %s46_s13  ;;  %p50_p6 = scmp.lt.u32.totalorder %s46_s13, %s86_s1 }
  0x8a   :  { %p52_p7 = pnand %p50_p6, %p47_p5 }
  0x8c   :  { %55 = shalt.err (!%p52_p7)
}
  0x8d   :  { %29 = dma.vmem_to_hbm [thread:$0]  %s27_s9, 32, %s86_s1, [#allocation1]  }
  0x8e   :  { %56 = dma.done.wait [#allocation1], 32  }
  0x8f   :  { %57 = vsyncadd [#allocation1], 4294967264 }
  0x90   :  { %31 = vsyncpa [#allocation1], 1 }

// kernel: line_head_forward.1
= control target key start
LH: loop header
LB: loop body
LE: loop exit
PB: predicated region body
PF: predicated region fallthrough
CT: control target
= control target key end

     0   :  { %v339_v0 = vmov 0.0   ;;  %vm340_vm0 = vmmov 0   ;;  %vm55_vm1 = vcmask 261120   ;;  %vm134_vm2 = vcmask 1040384   ;;  %s342_s19 = smov 96   ;;  %s441_s1 = inlined_call_operand.vmem [shape: bf16[32,33], index: 1, kind: input, shape index: {}]   ;;  %s442_s0 = inlined_call_operand.vmem [shape: f32[16,32], index: 0, kind: input, shape index: {}]   ;;  %s443_s3 = inlined_call_operand.vmem [shape: bf16[33,32], index: 3, kind: input, shape index: {}]   ;;  %s444_s2 = inlined_call_operand.vmem [shape: f32[1,33], index: 2, kind: input, shape index: {}]   ;;  %s445_s5 = inlined_call_operand.vmem [shape: bf16[32,8], index: 5, kind: input, shape index: {}]   ;;  %s446_s8 = inlined_call_operand.vmem [shape: f32[16,1], index: 8, kind: output, shape index: {1}]   ;;  %s447_s4 = inlined_call_operand.vmem [shape: f32[1,32], index: 4, kind: input, shape index: {}]   ;;  %s448_s6 = inlined_call_operand.vmem [shape: f32[1,8], index: 6, kind: input, shape index: {}]   ;;  %s449_s7 = inlined_call_operand.vmem [shape: f32[16,8], index: 7, kind: output, shape index: {0}]  }
   0x1   :  { %298 = vmatprep.subr.bf16.mxu0 %v339_v0  ;;  %v328_v1 = vld [vmem:[%s441_s1] sm:$0xff]   ;;  %302 = vmatprep.mubr.msk.bf16.mxu0 %vm340_vm0, %v339_v0  ;;  %v329_v2 = vld [vmem:[%s441_s1 + $0x8] sm:$0xff]   ;;  %v332_v8 = vld [vmem:[%s443_s3 + $0x10] ss:$0 sps:$4 sm:$0x11]   ;;  %v341_v9 = vmov 0  }
   0x2   :  { %306 = vmatprep.subr.bf16.mxu1 %v339_v0  ;;  %312 = vmatprep.mubr.msk.bf16.mxu1 %vm340_vm0, %v339_v0  ;;  %v29_v3 = vld [vmem:[%s442_s0] sm:$0xff]  ;;  %v30_v4 = vld [vmem:[%s442_s0 + $0x8] sm:$0xff]  ;;  %v136_v10 = vsel %vm134_vm2, 65535, %v341_v9  ;;  %vm130_vm3 = vcmask 269312   ;;  %vm264_vm4 = vcmask 7168   ;;  %vm253_vm5 = vcmask 64512  }
   0x3   :  { %299 = vmatpush3.bf16.msra.mxu0 %v328_v1  ;;  %v330_v5 = vld [vmem:[%s443_s3] sm:$0xff]   ;;  %v31_v6 = vpack.c.bf16 %v30_v4, %v29_v3  ;;  %v331_v7 = vld [vmem:[%s443_s3 + $0x8] sm:$0xff]   ;;  %v138_v11 = vand.u32 %v332_v8, %v136_v10 }
   0x4   :  { %300 = vmatprep.subr.bf16.mxu0 %v339_v0  ;;  %307 = vmatpush3.bf16.msra.mxu1 %v330_v5  ;;  %v275_v12 = vld [vmem:[%s444_s2] ss:$0 sm:$0xff]  ;;  %v334_v23 = vld [vmem:[%s445_s5 + $0x8] sm:$0xff]  }
   0x5   :  { %308 = vmatprep.subr.bf16.mxu1 %v339_v0  ;;  %v333_v22 = vld [vmem:[%s445_s5] sm:$0xff]  }
   0x6   :  { %v279_v26 = vld [vmem:[%s447_s4] ss:$0 sm:$0xff] }
   0x7   :  { %301 = vmatpush3.bf16.msra.mxu0 %v329_v2  ;;  %v284_v36 = vld [vmem:[%s448_s6] ss:$0 sm:$0xff] }
   0x8   :  { %316 = vmatprep.subr.bf16.mxu0 %v339_v0  ;;  %309 = vmatpush3.bf16.msra.mxu1 %v331_v7 }
   0x9   :  { %310 = vmatprep.subr.bf16.mxu1 %v339_v0 }
   0xa   :  { %303 = vmatmul.mubr.msk.bf16.vlgmr.msra.gmra.mrb[0].mxu0 %vm55_vm1, %v31_v6 }
   0xb   :  { %320 = vmatprep.mubr.msk.bf16.mxu0 %vm340_vm0, %v339_v0  ;;  %317 = vmatpush3.bf16.msra.mxu0 %v333_v22 }
   0xc   :  { %311 = vmatpush3.bf16.msra.mxu1 %v138_v11  ;;  %318 = vmatprep.subr.bf16.mxu0 %v339_v0 }
   0xf   :  { %319 = vmatpush3.bf16.msra.mxu0 %v334_v23 }
  0xdd   :  { %v93_v13 = vpop.f32.mrb[0].mxu0 }
  0xde   :  { %v94_v14 = vadd.f32 %v275_v12, %v93_v13  ;;  %v304_v15 = vpop.f32.mrb[1].mxu0 }
  0xdf   :  { %v96_v16 = vpop.f32.mrb[2].mxu0 }
  0xe0   :  { %v97_v17 = vadd.f32 %v275_v12, %v96_v16  ;;  %258 = vrot.lane.b32.xlu0 %v94_v14, %s342_s19  ;;  %v305_v18 = vpop.f32.mrb[3].mxu0  ;;  %v100_v19 = vmax.f32 %v94_v14, 0.0 }
  0xe2   :  { %v101_v20 = vmax.f32 %v97_v17, 0.0 }
  0xe4   :  { %v102_v21 = vpack.c.bf16 %v101_v20, %v100_v19  ;;  %260 = vrot.lane.b32.xlu0 %v97_v17, %s342_s19 }
  0xe6   :  { %313 = vmatmul.mubr.msk.bf16.vlgmr.msra.gmra.mrb[0].mxu1 %vm130_vm3, %v102_v21 }
 0x152   :  { %v259_v24 = vpop.permute.xlu0 %258 }
 0x153   :  { %265 = vst.msk [vmem:[%s446_s8] sm:$0xff] %vm264_vm4, %v259_v24 }
 0x156   :  { %v261_v25 = vpop.permute.xlu0 %260 }
 0x157   :  { %266 = vst.msk [vmem:[%s446_s8 + $0x8] sm:$0xff] %vm264_vm4, %v261_v25 }
 0x1b9   :  { %v174_v27 = vpop.f32.mrb[0].mxu1 }
 0x1ba   :  { %v175_v28 = vadd.f32 %v279_v26, %v174_v27  ;;  %v314_v29 = vpop.f32.mrb[1].mxu1 }
 0x1bb   :  { %v177_v30 = vpop.f32.mrb[2].mxu1 }
 0x1bc   :  { %v178_v31 = vadd.f32 %v279_v26, %v177_v30  ;;  %v315_v32 = vpop.f32.mrb[3].mxu1  ;;  %v181_v33 = vmax.f32 %v175_v28, 0.0 }
 0x1be   :  { %v182_v34 = vmax.f32 %v178_v31, 0.0 }
 0x1c0   :  { %v183_v35 = vpack.c.bf16 %v182_v34, %v181_v33 }
 0x1c2   :  { %321 = vmatmul.mubr.msk.bf16.vlgmr.msra.gmra.mrb[4].mxu0 %vm55_vm1, %v183_v35 }
 0x295   :  { %v244_v37 = vpop.f32.mrb[4].mxu0 }
 0x296   :  { %v245_v38 = vadd.f32 %v284_v36, %v244_v37  ;;  %v322_v39 = vpop.f32.mrb[5].mxu0 }
 0x297   :  { %v247_v40 = vpop.f32.mrb[6].mxu0 }
 0x298   :  { %335 = vtanh.f32 %v245_v38  ;;  %v248_v41 = vadd.f32 %v284_v36, %v247_v40  ;;  %v323_v42 = vpop.f32.mrb[7].mxu0 }
 0x29a   :  { %337 = vtanh.f32 %v248_v41 }
 0x2a2   :  { %v336_v43 = vpop.eup %335 }
 0x2a3   :  { %254 = vst.msk [vmem:[%s449_s7] sm:$0xff] %vm253_vm5, %v336_v43 }
 0x2a4   :  { %v338_v44 = vpop.eup %337 }
 0x2a5   :  { %255 = vst.msk [vmem:[%s449_s7 + $0x8] sm:$0xff] %vm253_vm5, %v338_v44 }

</bundles_post_ra>
